<compile_context>
chip_gen: v6e
topology: v6e:2x2x1
jax: 0.10.0
libtpu: 0.0.40
codegen_flags: <defaults>
</compile_context>

<pallas_src>
import jax
import jax.numpy as jnp
from jax.experimental import pallas as pl
from jax.experimental.pallas import tpu as pltpu

IN_FEATURES = 1000
OUT_FEATURES = 1000

# Lane-aligned (multiple-of-128) padded dims.
IN_PAD = 1024
OUT_PAD = 1024

# OUT-dim tile: 512 -> grid of 2.  Keeps the OUT grid a multiple of 2 so v7x
# can shard one tile per TensorCore, while halving per-step overhead on
# single-TC v5e/v6e.  Double-buffered bf16 weight tiles: 2 * 1024*512*2B = 2 MiB.
TN = 512


def linear_kernel(x_ref, w_ref, b_ref, o_ref):
    # x_ref: (B, IN_PAD) bf16, w_ref: (IN_PAD, TN) bf16,
    # b_ref: (1, TN) f32,     o_ref: (B, TN) f32
    acc = jnp.dot(x_ref[...], w_ref[...], preferred_element_type=jnp.float32)
    o_ref[...] = (acc + b_ref[...]).astype(o_ref.dtype)


def make_params(w, b):
    """One-time parameter setup (outside the per-step path).

    w: (OUT, IN) f32 PyTorch-layout weight, b: (OUT,) f32 bias.
    Returns (w_pad, b_pad): zero-padded, pre-transposed bf16 weight of shape
    (IN_PAD, OUT_PAD) and f32 bias of shape (1, OUT_PAD).
    """
    w_t = jnp.zeros((IN_PAD, OUT_PAD), dtype=jnp.float32)
    w_t = w_t.at[:IN_FEATURES, :OUT_FEATURES].set(w.T)
    w_pad = w_t.astype(jnp.bfloat16)
    b_pad = jnp.zeros((1, OUT_PAD), dtype=jnp.float32)
    b_pad = b_pad.at[0, :OUT_FEATURES].set(b)
    return w_pad, b_pad


@jax.jit
def linear_forward(x, w_pad, b_pad):
    """x: (B, IN_FEATURES) f32 -> (B, OUT_FEATURES) f32.

    Jitted so the activation pad/cast and the output slice fuse into the same
    compiled graph as the pallas_call (no separate tiny XLA launches).
    """
    B = x.shape[0]
    # Zero-pad the (small) activation to the lane-aligned K and cast to bf16.
    # Padded weight rows are also zero, so the extra K lanes contribute 0.
    x_pad = jnp.pad(x.astype(jnp.bfloat16),
                    ((0, 0), (0, IN_PAD - IN_FEATURES)))

    flops = 2 * B * IN_PAD * OUT_PAD
    bytes_accessed = (IN_PAD * OUT_PAD * 2      # bf16 weight
                      + B * IN_PAD * 2          # bf16 activation
                      + OUT_PAD * 4             # f32 bias
                      + B * OUT_PAD * 4)        # f32 output

    out = pl.pallas_call(
        linear_kernel,
        out_shape=jax.ShapeDtypeStruct((B, OUT_PAD), jnp.float32),
        grid_spec=pltpu.PrefetchScalarGridSpec(
            num_scalar_prefetch=0,
            grid=(OUT_PAD // TN,),
            in_specs=[
                pl.BlockSpec((B, IN_PAD), lambda j: (0, 0)),     # x resident
                pl.BlockSpec((IN_PAD, TN), lambda j: (0, j)),    # weight tile
                pl.BlockSpec((1, TN), lambda j: (0, j)),         # bias tile
            ],
            out_specs=pl.BlockSpec((B, TN), lambda j: (0, j)),
        ),
        compiler_params=pltpu.CompilerParams(
            # OUT tiles are fully independent -> shard across v7x's 2 TCs
            # (no-op on single-TC v5e/v6e).
            dimension_semantics=("parallel",),
        ),
        cost_estimate=pl.CostEstimate(
            flops=flops, transcendentals=0, bytes_accessed=bytes_accessed),
    )(x_pad, w_pad, b_pad)

    return out[:, :OUT_FEATURES]


if __name__ == "__main__":
    key = jax.random.PRNGKey(0)
    kx, kw, kb = jax.random.split(key, 3)

    batch = 8
    # Deterministic parameter init (mimics PyTorch Linear's U(-1/sqrt(in), 1/sqrt(in)))
    bound = 1.0 / (IN_FEATURES ** 0.5)
    w = jax.random.uniform(kw, (OUT_FEATURES, IN_FEATURES),
                           minval=-bound, maxval=bound, dtype=jnp.float32)
    b = jax.random.uniform(kb, (OUT_FEATURES,),
                           minval=-bound, maxval=bound, dtype=jnp.float32)
    x = jax.random.normal(kx, (batch, IN_FEATURES), dtype=jnp.float32)

    # One-time parameter prep (transpose + pad + bf16 cast).
    w_pad, b_pad = make_params(w, b)

    out = linear_forward(x, w_pad, b_pad)
    out = jax.block_until_ready(out)
    assert out.shape == (batch, OUT_FEATURES)

    # Reference 1: same-precision reference (bf16 inputs, f32 accumulation)
    # -> verifies kernel logic tightly.
    ref_bf16 = jnp.dot(x.astype(jnp.bfloat16), w.T.astype(jnp.bfloat16),
                       preferred_element_type=jnp.float32) + b
    assert jnp.allclose(out, ref_bf16, atol=1e-3, rtol=1e-2), "bf16-ref mismatch"

    # Reference 2: full-f32 PyTorch-equivalent reference with a tolerance
    # loosened for the bf16 weight/activation quantization.
    ref_f32 = x @ w.T + b
    assert jnp.allclose(out, ref_f32, atol=2e-2, rtol=2e-2), "f32-ref mismatch"

    print("KERNEL_OK")
</pallas_src>

<mosaic_0001>
module attributes {stable_mosaic.version = 11 : i64} {
  func.func @linear_kernel(%arg0: i32, %arg1: memref<8x1024xbf16, #tpu.memory_space<vmem>>, %arg2: memref<1024x512xbf16, #tpu.memory_space<vmem>>, %arg3: memref<1x512xf32, #tpu.memory_space<vmem>>, %arg4: memref<8x512xf32, #tpu.memory_space<vmem>>) attributes {dimension_semantics = [#tpu.dimension_semantics<parallel>], iteration_bounds = array<i64: 2>, scalar_prefetch = 0 : i64, scratch_operands = 0 : i64, tpu.core_type = #tpu.core_type<tc>, window_params = [{pipeline_mode = #tpu.pipeline_mode<synchronous>, transform_indices = @transform_0, window_bounds = array<i64: 8, 1024>}, {transform_indices = @transform_1, window_bounds = array<i64: 1024, 512>}, {transform_indices = @transform_2, window_bounds = array<i64: 1, 512>}, {transform_indices = @transform_3, window_bounds = array<i64: 8, 512>}]} {
    %c0 = arith.constant 0 : index
    %c0_0 = arith.constant 0 : index
    %0 = vector.load %arg1[%c0, %c0_0] : memref<8x1024xbf16, #tpu.memory_space<vmem>>, vector<8x1024xbf16>
    %c0_1 = arith.constant 0 : index
    %c0_2 = arith.constant 0 : index
    %1 = vector.load %arg2[%c0_1, %c0_2] : memref<1024x512xbf16, #tpu.memory_space<vmem>>, vector<1024x512xbf16>
    %cst = arith.constant dense<0.000000e+00> : vector<8x512xf32>
    %2 = tpu.matmul %0, %1, %cst {dimension_numbers = #tpu.dot_dimension_numbers<[1], [0], [0], [1], [0, 0, 1, 1], [], []>} : vector<8x1024xbf16>, vector<1024x512xbf16>, vector<8x512xf32> -> vector<8x512xf32>
    %c0_3 = arith.constant 0 : index
    %c0_4 = arith.constant 0 : index
    %3 = vector.load %arg3[%c0_3, %c0_4] : memref<1x512xf32, #tpu.memory_space<vmem>>, vector<1x512xf32>
    %4 = vector.broadcast %3 : vector<1x512xf32> to vector<8x512xf32>
    %5 = arith.addf %2, %4 : vector<8x512xf32>
    %c0_5 = arith.constant 0 : index
    %c0_6 = arith.constant 0 : index
    %6 = vector.load %arg4[%c0_5, %c0_6] : memref<8x512xf32, #tpu.memory_space<vmem>>, vector<8x512xf32>
    tpu.vector_store %arg4[%c0_5, %c0_6], %5 {strides = array<i32>} : memref<8x512xf32, #tpu.memory_space<vmem>>, vector<8x512xf32>,
    return
  }
  func.func @transform_0(%arg0: i32) -> (i32, i32) {
    %c0_i32 = arith.constant 0 : i32
    %c0_i32_0 = arith.constant 0 : i32
    %c0_i32_1 = arith.constant 0 : i32
    return %c0_i32, %c0_i32_0 : i32, i32
  }
  func.func @transform_1(%arg0: i32) -> (i32, i32) {
    %c0_i32 = arith.constant 0 : i32
    %c0_i32_0 = arith.constant 0 : i32
    return %c0_i32, %arg0 : i32, i32
  }
  func.func @transform_2(%arg0: i32) -> (i32, i32) {
    %c0_i32 = arith.constant 0 : i32
    %c0_i32_0 = arith.constant 0 : i32
    return %c0_i32, %arg0 : i32, i32
  }
  func.func @transform_3(%arg0: i32) -> (i32, i32) {
    %c0_i32 = arith.constant 0 : i32
    %c0_i32_0 = arith.constant 0 : i32
    return %c0_i32, %arg0 : i32, i32
  }
}

</mosaic_0001>

<bundles_post_ra>
// kernel: linear_forward.1
= control target key start
LH: loop header
LB: loop body
LE: loop exit
PB: predicated region body
PF: predicated region fallthrough
CT: control target
= control target key end

     0   :  { %8 = vsyncpa [#allocation3], 0  ;;  %s3669_s0 = inlined_call_operand.vmem [shape: bf16[8,1024], index: 0, kind: input, shape index: {}]   ;;  %s3670_s1 = inlined_call_operand.hbm [shape: bf16[1024,1024], index: 1, kind: input, shape index: {}]   ;;  %s3671_s2 = inlined_call_operand.hbm [shape: f32[1,1024], index: 2, kind: input, shape index: {}]   ;;  %s3672_s3 = inlined_call_operand.hbm [shape: f32[8,1024], index: 3, kind: output, shape index: {}]  }
   0x1   :  { %10 = vsyncpa [#allocation3 + $0x1], 0 }
   0x2   :  { %11 = vsyncpa [#allocation6], 0 }
   0x3   :  { %13 = vsyncpa [#allocation6 + $0x1], 0 }
   0x4   :  { %14 = vsyncpa [#allocation4], 0 }
   0x5   :  { %16 = vsyncpa [#allocation4 + $0x1], 0  ;;  %s3143_s12 = smov 0   ;;  %s3145_s13 = smov 0  }
   0x6   :  { %s3147_s14 = smov 0   ;;  %s3149_s15 = smov 0  }
   0x7 LB: > { %s3164_s16 = sadd.s32 4294967295, %s3115_s15   ;;  %s2260_s17 = sadd.s32 4294967294, %s3115_s15   ;;  %s3115_s15 = sphi %s3149_s15, %s3690_s15   ;;  %s3111_s14 = sphi %s3147_s14, %s3689_s14   ;;  %s3107_s13 = sphi %s3145_s13, %s3688_s13   ;;  %s3103_s12 = sphi %s3143_s12, %s3687_s12  }
   0x8   : > { %s3168_s18 = sadd.s32 1, %s3115_s15   ;;  %s50_s19 = sadd.s32 1, %s3111_s14 }
   0x9   : > { %s47_s20 = ssub.s32 %s3115_s15, %s3168_s18  ;;  %p57_p0 = scmp.ne.s32.totalorder %s3111_s14, %s3107_s13 }
   0xa   : > { %p48_p1 = scmp.eq.s32.totalorder %s47_s20, 0  ;;  %p58_p2 = scmp.eq.s32.totalorder %s3115_s15, 0 }
   0xb   : > { %p63_p3 = scmp.ne.s32.totalorder %s3107_s13, %s3103_s12  ;;  %p64_p4 = scmp.eq.s32.totalorder %s3164_s16, 0 }
   0xc   : > { %s3180_s21 = scalar_select %p48_p1, %s3111_s14, %s50_s19  }
   0xd   : > { %p3182_p5 = por %p58_p2, %p57_p0  ;;  %p3186_p6 = por %p64_p4, %p63_p3 }
   0xe   : > { %p113_p7 = scmp.eq.s32.totalorder %s3164_s16, 1  ;;  %p119_p8 = scmp.eq.s32.totalorder %s2260_s17, 1 }
   0xf   : > { %s3676_s23 = scalar_select %p3186_p6, 1, 0 }
  0x10   : > { %p2562_p10 = scmp.lt.s32.totalorder %s3115_s15, 2  ;;  %p3193_p11 = por %p113_p7, %p57_p0 }
  0x11   : > { %p3197_p12 = por %p119_p8, %p63_p3  ;;  %s3202_s26 = sand.u32 1, %s3111_s14  }
  0x12   : > { %s3677_s24 = scalar_select %p3193_p11, 1, 0 }
  0x13   : > { %s3678_s25 = scalar_select %p3197_p12, 1, 0 }
  0x14   : > { %s2542_s27 = sshll.u32 %s3115_s15, 8  ;;  %s2263_s28 = sshll.u32 %s3202_s26, 11 }
  0x15   : > { %s3209_s4 = scalar_lea.hbm %s3670_s1, %s2542_s27  ;;  %s146_s5 = scalar_lea.vmem [#allocation2], %s2263_s28 }
  0x16   : > { %s153_s6 = sshll.u32 %s146_s5, 4  ;;  %p3213_p13 = pnand %p2562_p10, %p3182_p5  ;;  %s3217_s6 = int_to_ptr.vmem [resolvable:$true] %s153_s6 }
  0x17   : > { %s143_s8 = scalar_lea.sflag [#allocation3], %s3202_s26  ;;  %s2991_s9 = scalar_lea.hbm %s3209_s4, 32768 }
  0x18   : > { %p2992_p1 = scmp.ne.s32.totalorder %s3209_s4, %s2991_s9  ;;  %p2993_p2 = pneg %p3213_p13 }
  0x19   : > { %s2996_s17 = scalar_lea.hbm %s3670_s1, 65536  ;;  %p2997_p5 = scmp.lt.s32.totalorder %s3209_s4, %s3670_s1 }
  0x1a   : > { %p2994_p3 = pnand %p2993_p2, %p2992_p1  ;;  %p2998_p7 = scmp.lt.s32.totalorder %s2996_s17, %s2991_s9 }
  0x1c   : > { %p2995_p4 = pneg %p2994_p3  ;;  %p2999_p8 = por %p2998_p7, %p2997_p5 }
  0x1e   : > { %p3000_p10 = pnand %p2999_p8, %p2995_p4 }
  0x20   : > { %3003 = shalt.err (!%p3000_p10)
}
  0x21   : > { %s3004_s22 = scalar_lea.vmem %s3217_s6, 32768  ;;  %s3117_s27 = smov [#allocation2]  }
  0x22   : > { %p3005_p9 = scmp.ne.s32.totalorder %s3217_s6, %s3004_s22  ;;  %s3009_s28 = sshll.u32 %s3117_s27, 4  ;;  %s3010_s28 = int_to_ptr.vmem [resolvable:$false] %s3009_s28 }
  0x23   : > { %s3011_s29 = scalar_lea.vmem %s3010_s28, 65536  ;;  %p3012_p0 = scmp.lt.s32.totalorder %s3217_s6, %s3010_s28 }
  0x24   : > { %p3007_p1 = pnand %p3005_p9, %p2993_p2  ;;  %p3013_p12 = scmp.lt.s32.totalorder %s3011_s29, %s3004_s22 }
  0x26   : > { %p3008_p3 = pneg %p3007_p1  ;;  %p3014_p11 = por %p3013_p12, %p3012_p0 }
  0x28   : > { %p3015_p5 = pnand %p3014_p11, %p3008_p3 }
  0x2a   : > { %3018 = shalt.err (!%p3015_p5)
}
  0x2b   : > { %s3118_s30 = smov 512   ;;  %s3119_s5 = smov 256  }
  0x2c   : > { %s3120_s9 = smov 16   ;;  %p180_p9 = scmp.lt.s32.totalorder %s3115_s15, 3 }
  0x2d   : > { %2554 = dma.hbm_to_vmem [thread:$0]  (!%p3213_p13), %s3209_s4, 32768, %s3217_s6, %s143_s8, %s3118_s30, %s3119_s5, %s3120_s9  }
  0x2e   : > { %s2266_s10 = sshll.u32 %s3202_s26, 2  ;;  %s2543_s11 = sshll.u32 %s3115_s15, 6 }
  0x2f   : > { %p3680_p11 = scmp.ge.s32.totalorder %s3115_s15, 1  ;;  %s3259_s22 = scalar_lea.hbm %s3671_s2, %s2543_s11 }
  0x30   : > { %s167_s27 = scalar_lea.vmem [#allocation5], %s2266_s10  ;;  %s164_s4 = scalar_lea.sflag [#allocation6], %s3202_s26 }
  0x31   : > { %p3252_p12 = pnand %p3680_p11, %p180_p9  ;;  %s175_s28 = sshll.u32 %s167_s27, 4  ;;  %s176_s28 = int_to_ptr.vmem [resolvable:$true] %s175_s28 }
  0x32   : > { %s3019_s6 = scalar_lea.hbm %s3259_s22, 64  ;;  %s3024_s30 = scalar_lea.hbm %s3671_s2, 128 }
  0x33   : > { %s3681_s17 = scalar_select %p3252_p12, 1, 0 }
  0x34   : > { %p3020_p0 = scmp.ne.s32.totalorder %s3259_s22, %s3019_s6  ;;  %p3025_p8 = scmp.lt.s32.totalorder %s3259_s22, %s3671_s2 }
  0x35   : > { %p3026_p10 = scmp.lt.s32.totalorder %s3024_s30, %s3019_s6 }
  0x36   : > { %p3022_p4 = pnand %p3020_p0, %p2993_p2 }
  0x37   : > { %p3027_p1 = por %p3026_p10, %p3025_p8 }
  0x38   : > { %p3023_p7 = pneg %p3022_p4 }
  0x3a   : > { %p3028_p3 = pnand %p3027_p1, %p3023_p7 }
  0x3c   : > { %3031 = shalt.err (!%p3028_p3)
}
  0x3d   : > { %s3032_s10 = scalar_lea.vmem %s176_s28, 64  ;;  %s3121_s26 = smov [#allocation5]  }
  0x3e   : > { %p3033_p5 = scmp.ne.s32.totalorder %s176_s28, %s3032_s10  ;;  %s3037_s11 = sshll.u32 %s3121_s26, 4  ;;  %s3038_s11 = int_to_ptr.vmem [resolvable:$false] %s3037_s11 }
  0x3f   : > { %s3039_s19 = scalar_lea.vmem %s3038_s11, 128  ;;  %p3040_p0 = scmp.lt.s32.totalorder %s176_s28, %s3038_s11 }
  0x40   : > { %p3035_p9 = pnand %p3033_p5, %p2993_p2  ;;  %p3041_p4 = scmp.lt.s32.totalorder %s3039_s19, %s3032_s10 }
  0x42   : > { %p3036_p11 = pneg %p3035_p9  ;;  %p3042_p6 = por %p3041_p4, %p3040_p0 }
  0x44   : > { %p3043_p12 = pnand %p3042_p6, %p3036_p11 }
  0x46   : > { %3046 = shalt.err (!%p3043_p12)
}
  0x47   : > { %2557 = dma.hbm_to_vmem [thread:$0]  (!%p3213_p13), %s3259_s22, 64, %s176_s28, %s164_s4  }
  0x48   : > { %p3682_p7 = scmp.ne.s32.totalorder %s3681_s17, 0 }
  0x49   : > { %s3283_s20 = sand.u32 (!%p3682_p7), 1, %s3107_s13   ;;  %p3683_p2 = scmp.ne.s32.totalorder (!%p3682_p7), %s3676_s23, 0 }
  0x4a   : > { %184 = sbr.rel (%p3682_p7) target bundleno = 552 (0x228), region = 32  ;;  %s2270_s27 = sshll.u32 (!%p3682_p7), %s3283_s20, 11 }
  0x4b   : > { %s187_s6 = scalar_lea.sflag (!%p3682_p7), [#allocation3], %s3283_s20  ;;  %s3287_s8 = scalar_lea.vmem (!%p3682_p7), [#allocation2], %s2270_s27 }
  0x4f   : > { %3090 = dma.done.wait (%p3683_p2), %s187_s6, 32768  }
  0x50   : > { %3092 = vsyncadd (%p3683_p2), %s187_s6, 4294934528  ;;  %s2271_s7 = sshll.u32 %s3283_s20, 2  ;;  %s196_s17 = scalar_lea.sflag [#allocation6], %s3283_s20 }
  0x51   : > { %s3295_s22 = scalar_lea.vmem [#allocation5], %s2271_s7 }
  0x52   : > { %3094 = dma.done.wait (%p3683_p2), %s196_s17, 64  }
  0x53   : > { %3096 = vsyncadd (%p3683_p2), %s196_s17, 4294967232  ;;  %v2599_v0 = vld [vmem:[%s3287_s8 + $0xe4] ss:$16 sps:$4 sm:$0xff]   ;;  %v2603_v2 = vld [vmem:[%s3287_s8 + $0xe0] ss:$16 sps:$4 sm:$0xff]   ;;  %s2272_s26 = sshll.u32 %s3283_s20, 5 }
  0x54   : > { %v2601_v1 = vld [vmem:[%s3287_s8 + $0x2e4] ss:$16 sps:$4 sm:$0xff]   ;;  %1820 = vmatprep.subr.bf16.mxu0 %v2599_v0  ;;  %v2604_v3 = vld [vmem:[%s3287_s8 + $0x2e0] ss:$16 sps:$4 sm:$0xff]   ;;  %v231_v48 = vld [vmem:[%s3669_s0 + $0x8] sm:$0xff]  ;;  %s3615_s11 = scalar_lea.vmem [#allocation7], %s2272_s26 }
  0x55   : > { %1861 = vmatprep.subr.bf16.mxu1 %v2601_v1  ;;  %v2605_v4 = vld [vmem:[%s3287_s8 + $0xc4] ss:$16 sps:$4 sm:$0xff]   ;;  %1821 = vmatpush1.bf16.msra.mxu0 %v2603_v2  ;;  %v2609_v6 = vld [vmem:[%s3287_s8 + $0xc0] ss:$16 sps:$4 sm:$0xff]   ;;  %v3357_v51 = vcombine.high %v231_v48, %v231_v48  ;;  %s2544_s19 = sshll.u32 %s3164_s16, 9  ;;  %s2167_s27 = sshll.u32 %s3615_s11, 4  ;;  %s3627_s27 = int_to_ptr.vmem [resolvable:$true] %s2167_s27 }
  0x56   : > { %1862 = vmatpush1.bf16.msra.mxu1 %v2604_v3  ;;  %v2607_v5 = vld [vmem:[%s3287_s8 + $0x2c4] ss:$16 sps:$4 sm:$0xff]   ;;  %1822 = vmatprep.subr.bf16.mxu0 %v2605_v4  ;;  %v2610_v7 = vld [vmem:[%s3287_s8 + $0x2c0] ss:$16 sps:$4 sm:$0xff]   ;;  %s3625_s7 = scalar_lea.hbm %s3672_s3, %s2544_s19  ;;  %s2153_s16 = scalar_lea.sflag [#allocation4], %s3283_s20 }
  0x57   : > { %1863 = vmatprep.subr.bf16.mxu1 %v2607_v5  ;;  %v2611_v8 = vld [vmem:[%s3287_s8 + $0xa4] ss:$16 sps:$4 sm:$0xff]   ;;  %v2615_v10 = vld [vmem:[%s3287_s8 + $0xa0] ss:$16 sps:$4 sm:$0xff]   ;;  %1893 = vmatprep.mubr.bf16.mxu1 %v3357_v51  ;;  %s3047_s17 = scalar_lea.vmem %s3627_s27, 512  ;;  %p3684_p13 = scmp.ne.s32.totalorder %s3677_s24, 0 }
  0x58   : > { %v2613_v9 = vld [vmem:[%s3287_s8 + $0x2a4] ss:$16 sps:$4 sm:$0xff]   ;;  %v2616_v11 = vld [vmem:[%s3287_s8 + $0x2a0] ss:$16 sps:$4 sm:$0xff]   ;;  %p3048_p6 = scmp.ne.s32.totalorder %s3627_s27, %s3047_s17 }
  0x59   : > { %1823 = vmatpush1.bf16.msra.mxu0 %v2609_v6  ;;  %v2617_v12 = vld [vmem:[%s3287_s8 + $0x84] ss:$16 sps:$4 sm:$0xff]   ;;  %v2621_v14 = vld [vmem:[%s3287_s8 + $0x80] ss:$16 sps:$4 sm:$0xff]  }
  0x5a   : > { %1864 = vmatpush1.bf16.msra.mxu1 %v2610_v7  ;;  %1824 = vmatprep.subr.bf16.mxu0 %v2611_v8  ;;  %v2619_v13 = vld [vmem:[%s3287_s8 + $0x284] ss:$16 sps:$4 sm:$0xff]   ;;  %v2622_v15 = vld [vmem:[%s3287_s8 + $0x280] ss:$16 sps:$4 sm:$0xff]   ;;  %v3381_v7 = vcombine.low %v231_v48, %v231_v48  ;;  %p3049_p12 = pnand %p3048_p6, %p3684_p13 }
  0x5b   : > { %1865 = vmatprep.subr.bf16.mxu1 %v2613_v9  ;;  %v2623_v16 = vld [vmem:[%s3287_s8 + $0x64] ss:$16 sps:$4 sm:$0xff]   ;;  %v2627_v18 = vld [vmem:[%s3287_s8 + $0x60] ss:$16 sps:$4 sm:$0xff]  }
  0x5c   : > { %v2625_v17 = vld [vmem:[%s3287_s8 + $0x264] ss:$16 sps:$4 sm:$0xff]   ;;  %v2628_v19 = vld [vmem:[%s3287_s8 + $0x260] ss:$16 sps:$4 sm:$0xff]   ;;  %p3050_p8 = pneg %p3049_p12 }
  0x5d   : > { %1825 = vmatpush1.bf16.msra.mxu0 %v2615_v10  ;;  %v2629_v20 = vld [vmem:[%s3287_s8 + $0x44] ss:$16 sps:$4 sm:$0xff]   ;;  %v2633_v22 = vld [vmem:[%s3287_s8 + $0x40] ss:$16 sps:$4 sm:$0xff]  }
  0x5e   : > { %1866 = vmatpush1.bf16.msra.mxu1 %v2616_v11  ;;  %1826 = vmatprep.subr.bf16.mxu0 %v2617_v12  ;;  %v2631_v21 = vld [vmem:[%s3287_s8 + $0x244] ss:$16 sps:$4 sm:$0xff]   ;;  %v2634_v23 = vld [vmem:[%s3287_s8 + $0x240] ss:$16 sps:$4 sm:$0xff]  }
  0x5f   : > { %1867 = vmatprep.subr.bf16.mxu1 %v2619_v13  ;;  %v2635_v24 = vld [vmem:[%s3287_s8 + $0x24] ss:$16 sps:$4 sm:$0xff]   ;;  %v2639_v26 = vld [vmem:[%s3287_s8 + $0x20] ss:$16 sps:$4 sm:$0xff]  }
  0x60   : > { %v2637_v25 = vld [vmem:[%s3287_s8 + $0x224] ss:$16 sps:$4 sm:$0xff]   ;;  %v2640_v27 = vld [vmem:[%s3287_s8 + $0x220] ss:$16 sps:$4 sm:$0xff]  }
  0x61   : > { %1827 = vmatpush1.bf16.msra.mxu0 %v2621_v14  ;;  %v2641_v28 = vld [vmem:[%s3287_s8 + $0x4] ss:$16 sps:$4 sm:$0xff]   ;;  %v2645_v30 = vld [vmem:[%s3287_s8] ss:$16 sps:$4 sm:$0xff]  }
  0x62   : > { %1868 = vmatpush1.bf16.msra.mxu1 %v2622_v15  ;;  %1828 = vmatprep.subr.bf16.mxu0 %v2623_v16  ;;  %v2643_v29 = vld [vmem:[%s3287_s8 + $0x204] ss:$16 sps:$4 sm:$0xff]   ;;  %v2646_v31 = vld [vmem:[%s3287_s8 + $0x200] ss:$16 sps:$4 sm:$0xff]  }
  0x63   : > { %1869 = vmatprep.subr.bf16.mxu1 %v2625_v17  ;;  %v2647_v32 = vld [vmem:[%s3287_s8 + $0x1e4] ss:$16 sps:$4 sm:$0xff]   ;;  %v2651_v34 = vld [vmem:[%s3287_s8 + $0x1e0] ss:$16 sps:$4 sm:$0xff]  }
  0x64   : > { %v2649_v33 = vld [vmem:[%s3287_s8 + $0x3e4] ss:$16 sps:$4 sm:$0xff]   ;;  %v2652_v35 = vld [vmem:[%s3287_s8 + $0x3e0] ss:$16 sps:$4 sm:$0xff]  }
  0x65   : > { %1829 = vmatpush1.bf16.msra.mxu0 %v2627_v18  ;;  %v2653_v36 = vld [vmem:[%s3287_s8 + $0x1c4] ss:$16 sps:$4 sm:$0xff]   ;;  %v2657_v38 = vld [vmem:[%s3287_s8 + $0x1c0] ss:$16 sps:$4 sm:$0xff]  }
  0x66   : > { %1870 = vmatpush1.bf16.msra.mxu1 %v2628_v19  ;;  %1830 = vmatprep.subr.bf16.mxu0 %v2629_v20  ;;  %v2655_v37 = vld [vmem:[%s3287_s8 + $0x3c4] ss:$16 sps:$4 sm:$0xff]   ;;  %v2658_v39 = vld [vmem:[%s3287_s8 + $0x3c0] ss:$16 sps:$4 sm:$0xff]  }
  0x67   : > { %1871 = vmatprep.subr.bf16.mxu1 %v2631_v21  ;;  %v2659_v40 = vld [vmem:[%s3287_s8 + $0x1a4] ss:$16 sps:$4 sm:$0xff]   ;;  %v2663_v42 = vld [vmem:[%s3287_s8 + $0x1a0] ss:$16 sps:$4 sm:$0xff]  }
  0x68   : > { %v2661_v41 = vld [vmem:[%s3287_s8 + $0x3a4] ss:$16 sps:$4 sm:$0xff]   ;;  %v2664_v43 = vld [vmem:[%s3287_s8 + $0x3a0] ss:$16 sps:$4 sm:$0xff]  }
  0x69   : > { %1831 = vmatpush1.bf16.msra.mxu0 %v2633_v22  ;;  %v2665_v44 = vld [vmem:[%s3287_s8 + $0x184] ss:$16 sps:$4 sm:$0xff]   ;;  %v2669_v49 = vld [vmem:[%s3287_s8 + $0x180] ss:$16 sps:$4 sm:$0xff]  }
  0x6a   : > { %1872 = vmatpush1.bf16.msra.mxu1 %v2634_v23  ;;  %1832 = vmatprep.subr.bf16.mxu0 %v2635_v24  ;;  %v2667_v45 = vld [vmem:[%s3287_s8 + $0x384] ss:$16 sps:$4 sm:$0xff]   ;;  %v2670_v50 = vld [vmem:[%s3287_s8 + $0x380] ss:$16 sps:$4 sm:$0xff]  }
  0x6b   : > { %1873 = vmatprep.subr.bf16.mxu1 %v2637_v25  ;;  %v230_v46 = vld [vmem:[%s3669_s0] sm:$0xff] }
  0x6c   : > { %v3350_v47 = vcombine.high %v230_v46, %v230_v46  ;;  %v2671_v52 = vld [vmem:[%s3287_s8 + $0x164] ss:$16 sps:$4 sm:$0xff]   ;;  %v2675_v54 = vld [vmem:[%s3287_s8 + $0x160] ss:$16 sps:$4 sm:$0xff]   ;;  %v3379_v6 = vcombine.low %v230_v46, %v230_v46 }
  0x6d   : > { %1833 = vmatpush1.bf16.msra.mxu0 %v2639_v26  ;;  %v2673_v53 = vld [vmem:[%s3287_s8 + $0x364] ss:$16 sps:$4 sm:$0xff]   ;;  %v2676_v55 = vld [vmem:[%s3287_s8 + $0x360] ss:$16 sps:$4 sm:$0xff]  }
  0x6e   : > { %1874 = vmatpush1.bf16.msra.mxu1 %v2640_v27  ;;  %1834 = vmatprep.subr.bf16.mxu0 %v2641_v28  ;;  %v2677_v56 = vld [vmem:[%s3287_s8 + $0x144] ss:$16 sps:$4 sm:$0xff]   ;;  %v2681_v58 = vld [vmem:[%s3287_s8 + $0x140] ss:$16 sps:$4 sm:$0xff]  }
  0x6f   : > { %1875 = vmatprep.subr.bf16.mxu1 %v2643_v29  ;;  %1852 = vmatprep.mubr.bf16.mxu0 %v3350_v47  ;;  %v2679_v57 = vld [vmem:[%s3287_s8 + $0x344] ss:$16 sps:$4 sm:$0xff]   ;;  %v2682_v59 = vld [vmem:[%s3287_s8 + $0x340] ss:$16 sps:$4 sm:$0xff]  }
  0x70   : > { %v2683_v60 = vld [vmem:[%s3287_s8 + $0x124] ss:$16 sps:$4 sm:$0xff]   ;;  %v2687_v62 = vld [vmem:[%s3287_s8 + $0x120] ss:$16 sps:$4 sm:$0xff]  }
  0x71   : > { %1835 = vmatpush1.bf16.msra.mxu0 %v2645_v30  ;;  %v2685_v61 = vld [vmem:[%s3287_s8 + $0x324] ss:$16 sps:$4 sm:$0xff]   ;;  %v2688_v63 = vld [vmem:[%s3287_s8 + $0x320] ss:$16 sps:$4 sm:$0xff]  }
  0x72   : > { %1876 = vmatpush1.bf16.msra.mxu1 %v2646_v31  ;;  %1836 = vmatprep.subr.bf16.mxu0 %v2647_v32  ;;  %v2689_v0 = vld [vmem:[%s3287_s8 + $0x104] ss:$16 sps:$4 sm:$0xff]   ;;  %v2693_v2 = vld [vmem:[%s3287_s8 + $0x100] ss:$16 sps:$4 sm:$0xff]  }
  0x73   : > { %1877 = vmatprep.subr.bf16.mxu1 %v2649_v33  ;;  %v2691_v1 = vld [vmem:[%s3287_s8 + $0x304] ss:$16 sps:$4 sm:$0xff]   ;;  %v2694_v3 = vld [vmem:[%s3287_s8 + $0x300] ss:$16 sps:$4 sm:$0xff]   ;;  %v3417_v33 = vld [vmem:[%s3669_s0 + $0x18] sm:$0xff] }
  0x74   : > { %v2701_v4 = vld [vmem:[%s3287_s8 + $0x4e4] ss:$16 sps:$4 sm:$0xff]   ;;  %v2699_v8 = vld [vmem:[%s3287_s8 + $0x4e0] ss:$16 sps:$4 sm:$0xff]  }
  0x75   : > { %1837 = vmatpush2.bf16.msra.mxu0 %v2651_v34  ;;  %v2704_v5 = vld [vmem:[%s3287_s8 + $0x6e4] ss:$16 sps:$4 sm:$0xff]   ;;  %v2702_v9 = vld [vmem:[%s3287_s8 + $0x6e0] ss:$16 sps:$4 sm:$0xff]  }
  0x76   : > { %1878 = vmatpush2.bf16.msra.mxu1 %v2652_v35  ;;  %1838 = vmatprep.subr.bf16.mxu0 %v2653_v36  ;;  %v2707_v10 = vld [vmem:[%s3287_s8 + $0x4c4] ss:$16 sps:$4 sm:$0xff]   ;;  %v2705_v12 = vld [vmem:[%s3287_s8 + $0x4c0] ss:$16 sps:$4 sm:$0xff]  }
  0x77   : > { %1879 = vmatprep.subr.bf16.mxu1 %v2655_v37  ;;  %v2710_v11 = vld [vmem:[%s3287_s8 + $0x6c4] ss:$16 sps:$4 sm:$0xff]   ;;  %v2708_v13 = vld [vmem:[%s3287_s8 + $0x6c0] ss:$16 sps:$4 sm:$0xff]   ;;  %v3427_v37 = vcombine.high %v3417_v33, %v3417_v33 }
  0x78   : > { %v2713_v14 = vld [vmem:[%s3287_s8 + $0x4a4] ss:$16 sps:$4 sm:$0xff]   ;;  %v2711_v16 = vld [vmem:[%s3287_s8 + $0x4a0] ss:$16 sps:$4 sm:$0xff]  }
  0x79   : > { %1839 = vmatpush2.bf16.msra.mxu0 %v2657_v38  ;;  %v2716_v15 = vld [vmem:[%s3287_s8 + $0x6a4] ss:$16 sps:$4 sm:$0xff]   ;;  %v2714_v17 = vld [vmem:[%s3287_s8 + $0x6a0] ss:$16 sps:$4 sm:$0xff]  }
  0x7a   : > { %1880 = vmatpush2.bf16.msra.mxu1 %v2658_v39  ;;  %1840 = vmatprep.subr.bf16.mxu0 %v2659_v40  ;;  %v2719_v18 = vld [vmem:[%s3287_s8 + $0x484] ss:$16 sps:$4 sm:$0xff]   ;;  %v2717_v20 = vld [vmem:[%s3287_s8 + $0x480] ss:$16 sps:$4 sm:$0xff]  }
  0x7b   : > { %1881 = vmatprep.subr.bf16.mxu1 %v2661_v41  ;;  %v2722_v19 = vld [vmem:[%s3287_s8 + $0x684] ss:$16 sps:$4 sm:$0xff]   ;;  %v2720_v21 = vld [vmem:[%s3287_s8 + $0x680] ss:$16 sps:$4 sm:$0xff]  }
  0x7c   : > { %v2725_v22 = vld [vmem:[%s3287_s8 + $0x464] ss:$16 sps:$4 sm:$0xff]   ;;  %v2723_v24 = vld [vmem:[%s3287_s8 + $0x460] ss:$16 sps:$4 sm:$0xff]  }
  0x7d   : > { %1841 = vmatpush2.bf16.msra.mxu0 %v2663_v42  ;;  %v2728_v23 = vld [vmem:[%s3287_s8 + $0x664] ss:$16 sps:$4 sm:$0xff]   ;;  %v2726_v25 = vld [vmem:[%s3287_s8 + $0x660] ss:$16 sps:$4 sm:$0xff]  }
  0x7e   : > { %1882 = vmatpush2.bf16.msra.mxu1 %v2664_v43  ;;  %1842 = vmatprep.subr.bf16.mxu0 %v2665_v44  ;;  %v2731_v26 = vld [vmem:[%s3287_s8 + $0x444] ss:$16 sps:$4 sm:$0xff]   ;;  %v2729_v28 = vld [vmem:[%s3287_s8 + $0x440] ss:$16 sps:$4 sm:$0xff]  }
  0x7f   : > { %1883 = vmatprep.subr.bf16.mxu1 %v2667_v45  ;;  %v2734_v27 = vld [vmem:[%s3287_s8 + $0x644] ss:$16 sps:$4 sm:$0xff]   ;;  %v2732_v29 = vld [vmem:[%s3287_s8 + $0x640] ss:$16 sps:$4 sm:$0xff]  }
  0x80   : > { %v2737_v30 = vld [vmem:[%s3287_s8 + $0x424] ss:$16 sps:$4 sm:$0xff]   ;;  %v2735_v34 = vld [vmem:[%s3287_s8 + $0x420] ss:$16 sps:$4 sm:$0xff]  }
  0x81   : > { %1843 = vmatpush2.bf16.msra.mxu0 %v2669_v49  ;;  %v2740_v31 = vld [vmem:[%s3287_s8 + $0x624] ss:$16 sps:$4 sm:$0xff]   ;;  %v2738_v35 = vld [vmem:[%s3287_s8 + $0x620] ss:$16 sps:$4 sm:$0xff]  }
  0x82   : > { %1884 = vmatpush2.bf16.msra.mxu1 %v2670_v50  ;;  %1844 = vmatprep.subr.bf16.mxu0 %v2671_v52  ;;  %v3412_v32 = vld [vmem:[%s3669_s0 + $0x10] sm:$0xff] }
  0x83   : > { %1885 = vmatprep.subr.bf16.mxu1 %v2673_v53  ;;  %v3423_v36 = vcombine.high %v3412_v32, %v3412_v32  ;;  %v2743_v38 = vld [vmem:[%s3287_s8 + $0x404] ss:$16 sps:$4 sm:$0xff]   ;;  %v2741_v40 = vld [vmem:[%s3287_s8 + $0x400] ss:$16 sps:$4 sm:$0xff]  }
  0x84   : > { %v2746_v39 = vld [vmem:[%s3287_s8 + $0x604] ss:$16 sps:$4 sm:$0xff]   ;;  %v2744_v41 = vld [vmem:[%s3287_s8 + $0x600] ss:$16 sps:$4 sm:$0xff]  }
  0x85   : > { %1845 = vmatpush2.bf16.msra.mxu0 %v2675_v54  ;;  %v2749_v42 = vld [vmem:[%s3287_s8 + $0x5e4] ss:$16 sps:$4 sm:$0xff]   ;;  %v2747_v44 = vld [vmem:[%s3287_s8 + $0x5e0] ss:$16 sps:$4 sm:$0xff]  }
  0x86   : > { %1886 = vmatpush2.bf16.msra.mxu1 %v2676_v55  ;;  %1846 = vmatprep.subr.bf16.mxu0 %v2677_v56  ;;  %v2752_v43 = vld [vmem:[%s3287_s8 + $0x7e4] ss:$16 sps:$4 sm:$0xff]   ;;  %v2750_v45 = vld [vmem:[%s3287_s8 + $0x7e0] ss:$16 sps:$4 sm:$0xff]  }
  0x87   : > { %1887 = vmatprep.subr.bf16.mxu1 %v2679_v57  ;;  %v2755_v46 = vld [vmem:[%s3287_s8 + $0x5c4] ss:$16 sps:$4 sm:$0xff]   ;;  %v2753_v49 = vld [vmem:[%s3287_s8 + $0x5c0] ss:$16 sps:$4 sm:$0xff]  }
  0x88   : > { %v2758_v48 = vld [vmem:[%s3287_s8 + $0x7c4] ss:$16 sps:$4 sm:$0xff]   ;;  %v2756_v50 = vld [vmem:[%s3287_s8 + $0x7c0] ss:$16 sps:$4 sm:$0xff]  }
  0x89   : > { %1847 = vmatpush2.bf16.msra.mxu0 %v2681_v58  ;;  %v2761_v52 = vld [vmem:[%s3287_s8 + $0x5a4] ss:$16 sps:$4 sm:$0xff]   ;;  %v2759_v54 = vld [vmem:[%s3287_s8 + $0x5a0] ss:$16 sps:$4 sm:$0xff]  }
  0x8a   : > { %1888 = vmatpush2.bf16.msra.mxu1 %v2682_v59  ;;  %1848 = vmatprep.subr.bf16.mxu0 %v2683_v60  ;;  %v2764_v53 = vld [vmem:[%s3287_s8 + $0x7a4] ss:$16 sps:$4 sm:$0xff]   ;;  %v2762_v55 = vld [vmem:[%s3287_s8 + $0x7a0] ss:$16 sps:$4 sm:$0xff]  }
  0x8b   : > { %1889 = vmatprep.subr.bf16.mxu1 %v2685_v61  ;;  %v2767_v56 = vld [vmem:[%s3287_s8 + $0x584] ss:$16 sps:$4 sm:$0xff]   ;;  %v2765_v58 = vld [vmem:[%s3287_s8 + $0x580] ss:$16 sps:$4 sm:$0xff]  }
  0x8c   : > { %v2770_v57 = vld [vmem:[%s3287_s8 + $0x784] ss:$16 sps:$4 sm:$0xff]   ;;  %v2768_v59 = vld [vmem:[%s3287_s8 + $0x780] ss:$16 sps:$4 sm:$0xff]  }
  0x8d   : > { %1849 = vmatpush2.bf16.msra.mxu0 %v2687_v62  ;;  %v2773_v60 = vld [vmem:[%s3287_s8 + $0x564] ss:$16 sps:$4 sm:$0xff]   ;;  %v2771_v62 = vld [vmem:[%s3287_s8 + $0x560] ss:$16 sps:$4 sm:$0xff]  }
  0x8e   : > { %1890 = vmatpush2.bf16.msra.mxu1 %v2688_v63  ;;  %1850 = vmatprep.subr.bf16.mxu0 %v2689_v0  ;;  %v2776_v61 = vld [vmem:[%s3287_s8 + $0x764] ss:$16 sps:$4 sm:$0xff]   ;;  %v2774_v63 = vld [vmem:[%s3287_s8 + $0x760] ss:$16 sps:$4 sm:$0xff]  }
  0x8f   : > { %1891 = vmatprep.subr.bf16.mxu1 %v2691_v1  ;;  %v2779_v0 = vld [vmem:[%s3287_s8 + $0x544] ss:$16 sps:$4 sm:$0xff]  }
  0x90   : > { %v2782_v1 = vld [vmem:[%s3287_s8 + $0x744] ss:$16 sps:$4 sm:$0xff]  }
  0x91   : > { %1851 = vmatpush2.bf16.msra.mxu0 %v2693_v2  ;;  %v2777_v2 = vld [vmem:[%s3287_s8 + $0x540] ss:$16 sps:$4 sm:$0xff]  }
  0x92   : > { %1892 = vmatpush2.bf16.msra.mxu1 %v2694_v3  ;;  %1902 = vmatprep.subr.bf16.mxu0 %v2701_v4  ;;  %v2780_v3 = vld [vmem:[%s3287_s8 + $0x740] ss:$16 sps:$4 sm:$0xff]   ;;  %v2785_v4 = vld [vmem:[%s3287_s8 + $0x524] ss:$16 sps:$4 sm:$0xff]  }
  0x93   : > { %1943 = vmatprep.subr.bf16.mxu1 %v2704_v5  ;;  %v2788_v5 = vld [vmem:[%s3287_s8 + $0x724] ss:$16 sps:$4 sm:$0xff]  }
  0x94   : > { %1853 = vmatmul.mubr.bf16.vlgmr.msra.gmra.mxu0 %v3379_v6 }
  0x95   : > { %1894 = vmatmul.mubr.bf16.vlgmr.msra.gmra.mxu1 %v3381_v7  ;;  %1903 = vmatpush1.bf16.msra.mxu0 %v2699_v8  ;;  %v2783_v8 = vld [vmem:[%s3287_s8 + $0x520] ss:$16 sps:$4 sm:$0xff]  }
  0x96   : > { %1944 = vmatpush1.bf16.msra.mxu1 %v2702_v9  ;;  %1904 = vmatprep.subr.bf16.mxu0 %v2707_v10  ;;  %v2786_v9 = vld [vmem:[%s3287_s8 + $0x720] ss:$16 sps:$4 sm:$0xff]   ;;  %v2791_v10 = vld [vmem:[%s3287_s8 + $0x504] ss:$16 sps:$4 sm:$0xff]  }
  0x97   : > { %1945 = vmatprep.subr.bf16.mxu1 %v2710_v11  ;;  %1934 = vmatprep.mubr.bf16.mxu0 %v3423_v36  ;;  %v2794_v11 = vld [vmem:[%s3287_s8 + $0x704] ss:$16 sps:$4 sm:$0xff]  }
  0x98   : > { %1975 = vmatprep.mubr.bf16.mxu1 %v3427_v37 }
  0x99   : > { %1905 = vmatpush1.bf16.msra.mxu0 %v2705_v12  ;;  %v2789_v12 = vld [vmem:[%s3287_s8 + $0x500] ss:$16 sps:$4 sm:$0xff]  }
  0x9a   : > { %1946 = vmatpush1.bf16.msra.mxu1 %v2708_v13  ;;  %1906 = vmatprep.subr.bf16.mxu0 %v2713_v14  ;;  %v2792_v13 = vld [vmem:[%s3287_s8 + $0x700] ss:$16 sps:$4 sm:$0xff]   ;;  %v2801_v14 = vld [vmem:[%s3287_s8 + $0xec] ss:$16 sps:$4 sm:$0xff]  }
  0x9b   : > { %1947 = vmatprep.subr.bf16.mxu1 %v2716_v15  ;;  %v2804_v15 = vld [vmem:[%s3287_s8 + $0x2ec] ss:$16 sps:$4 sm:$0xff]  }
  0x9d   : > { %1907 = vmatpush1.bf16.msra.mxu0 %v2711_v16  ;;  %v3471_v16 = vcombine.low %v3412_v32, %v3412_v32  ;;  %v2823_v32 = vld [vmem:[%s3287_s8 + $0x68] ss:$16 sps:$4 sm:$0xff]  }
  0x9e   : > { %1948 = vmatpush1.bf16.msra.mxu1 %v2714_v17  ;;  %1908 = vmatprep.subr.bf16.mxu0 %v2719_v18  ;;  %v3475_v17 = vcombine.low %v3417_v33, %v3417_v33  ;;  %v2799_v18 = vld [vmem:[%s3287_s8 + $0xe8] ss:$16 sps:$4 sm:$0xff]  }
  0x9f   : > { %1949 = vmatprep.subr.bf16.mxu1 %v2722_v19  ;;  %v2802_v19 = vld [vmem:[%s3287_s8 + $0x2e8] ss:$16 sps:$4 sm:$0xff]  }
  0xa0   : > { %v2826_v33 = vld [vmem:[%s3287_s8 + $0x268] ss:$16 sps:$4 sm:$0xff]  }
  0xa1   : > { %1909 = vmatpush1.bf16.msra.mxu0 %v2717_v20  ;;  %v2807_v20 = vld [vmem:[%s3287_s8 + $0xcc] ss:$16 sps:$4 sm:$0xff]  }
  0xa2   : > { %1950 = vmatpush1.bf16.msra.mxu1 %v2720_v21  ;;  %1910 = vmatprep.subr.bf16.mxu0 %v2725_v22  ;;  %v2810_v21 = vld [vmem:[%s3287_s8 + $0x2cc] ss:$16 sps:$4 sm:$0xff]   ;;  %v2805_v22 = vld [vmem:[%s3287_s8 + $0xc8] ss:$16 sps:$4 sm:$0xff]  }
  0xa3   : > { %1951 = vmatprep.subr.bf16.mxu1 %v2728_v23  ;;  %v2808_v23 = vld [vmem:[%s3287_s8 + $0x2c8] ss:$16 sps:$4 sm:$0xff]  }
  0xa5   : > { %1911 = vmatpush1.bf16.msra.mxu0 %v2723_v24  ;;  %v2813_v24 = vld [vmem:[%s3287_s8 + $0xac] ss:$16 sps:$4 sm:$0xff]  }
  0xa6   : > { %1952 = vmatpush1.bf16.msra.mxu1 %v2726_v25  ;;  %1912 = vmatprep.subr.bf16.mxu0 %v2731_v26  ;;  %v2816_v25 = vld [vmem:[%s3287_s8 + $0x2ac] ss:$16 sps:$4 sm:$0xff]   ;;  %v2811_v26 = vld [vmem:[%s3287_s8 + $0xa8] ss:$16 sps:$4 sm:$0xff]  }
  0xa7   : > { %1953 = vmatprep.subr.bf16.mxu1 %v2734_v27  ;;  %v2814_v27 = vld [vmem:[%s3287_s8 + $0x2a8] ss:$16 sps:$4 sm:$0xff]  }
  0xa9   : > { %1913 = vmatpush1.bf16.msra.mxu0 %v2729_v28  ;;  %v2819_v28 = vld [vmem:[%s3287_s8 + $0x8c] ss:$16 sps:$4 sm:$0xff]  }
  0xaa   : > { %1954 = vmatpush1.bf16.msra.mxu1 %v2732_v29  ;;  %1914 = vmatprep.subr.bf16.mxu0 %v2737_v30  ;;  %v2822_v29 = vld [vmem:[%s3287_s8 + $0x28c] ss:$16 sps:$4 sm:$0xff]   ;;  %v2817_v30 = vld [vmem:[%s3287_s8 + $0x88] ss:$16 sps:$4 sm:$0xff]  }
  0xab   : > { %1955 = vmatprep.subr.bf16.mxu1 %v2740_v31  ;;  %v2820_v31 = vld [vmem:[%s3287_s8 + $0x288] ss:$16 sps:$4 sm:$0xff]  }
  0xad   : > { %1915 = vmatpush1.bf16.msra.mxu0 %v2735_v34  ;;  %v2831_v34 = vld [vmem:[%s3287_s8 + $0x4c] ss:$16 sps:$4 sm:$0xff]  }
  0xae   : > { %1956 = vmatpush1.bf16.msra.mxu1 %v2738_v35  ;;  %1916 = vmatprep.subr.bf16.mxu0 %v2743_v38  ;;  %v2834_v35 = vld [vmem:[%s3287_s8 + $0x24c] ss:$16 sps:$4 sm:$0xff]   ;;  %v2829_v38 = vld [vmem:[%s3287_s8 + $0x48] ss:$16 sps:$4 sm:$0xff]  }
  0xaf   : > { %1957 = vmatprep.subr.bf16.mxu1 %v2746_v39  ;;  %v2832_v39 = vld [vmem:[%s3287_s8 + $0x248] ss:$16 sps:$4 sm:$0xff]  }
  0xb1   : > { %1917 = vmatpush1.bf16.msra.mxu0 %v2741_v40  ;;  %v2837_v40 = vld [vmem:[%s3287_s8 + $0x2c] ss:$16 sps:$4 sm:$0xff]  }
  0xb2   : > { %1958 = vmatpush1.bf16.msra.mxu1 %v2744_v41  ;;  %1918 = vmatprep.subr.bf16.mxu0 %v2749_v42  ;;  %v2840_v41 = vld [vmem:[%s3287_s8 + $0x22c] ss:$16 sps:$4 sm:$0xff]   ;;  %v2835_v42 = vld [vmem:[%s3287_s8 + $0x28] ss:$16 sps:$4 sm:$0xff]  }
  0xb3   : > { %1959 = vmatprep.subr.bf16.mxu1 %v2752_v43  ;;  %v2838_v43 = vld [vmem:[%s3287_s8 + $0x228] ss:$16 sps:$4 sm:$0xff]  }
  0xb5   : > { %1919 = vmatpush2.bf16.msra.mxu0 %v2747_v44  ;;  %v2843_v44 = vld [vmem:[%s3287_s8 + $0xc] ss:$16 sps:$4 sm:$0xff]  }
  0xb6   : > { %1960 = vmatpush2.bf16.msra.mxu1 %v2750_v45  ;;  %1920 = vmatprep.subr.bf16.mxu0 %v2755_v46  ;;  %v2846_v45 = vld [vmem:[%s3287_s8 + $0x20c] ss:$16 sps:$4 sm:$0xff]   ;;  %v2841_v46 = vld [vmem:[%s3287_s8 + $0x8] ss:$16 sps:$4 sm:$0xff]  }
  0xb7   : > { %1961 = vmatprep.subr.bf16.mxu1 %v2758_v48  ;;  %v2844_v48 = vld [vmem:[%s3287_s8 + $0x208] ss:$16 sps:$4 sm:$0xff]  }
  0xb9   : > { %1921 = vmatpush2.bf16.msra.mxu0 %v2753_v49  ;;  %v2849_v49 = vld [vmem:[%s3287_s8 + $0x1ec] ss:$16 sps:$4 sm:$0xff]  }
  0xba   : > { %1962 = vmatpush2.bf16.msra.mxu1 %v2756_v50  ;;  %1922 = vmatprep.subr.bf16.mxu0 %v2761_v52  ;;  %v2852_v50 = vld [vmem:[%s3287_s8 + $0x3ec] ss:$16 sps:$4 sm:$0xff]   ;;  %v2847_v52 = vld [vmem:[%s3287_s8 + $0x1e8] ss:$16 sps:$4 sm:$0xff]  }
  0xbb   : > { %1963 = vmatprep.subr.bf16.mxu1 %v2764_v53  ;;  %v2850_v53 = vld [vmem:[%s3287_s8 + $0x3e8] ss:$16 sps:$4 sm:$0xff]  }
  0xbd   : > { %1923 = vmatpush2.bf16.msra.mxu0 %v2759_v54  ;;  %v2855_v54 = vld [vmem:[%s3287_s8 + $0x1cc] ss:$16 sps:$4 sm:$0xff]  }
  0xbe   : > { %1964 = vmatpush2.bf16.msra.mxu1 %v2762_v55  ;;  %1924 = vmatprep.subr.bf16.mxu0 %v2767_v56  ;;  %v2858_v55 = vld [vmem:[%s3287_s8 + $0x3cc] ss:$16 sps:$4 sm:$0xff]   ;;  %v2853_v56 = vld [vmem:[%s3287_s8 + $0x1c8] ss:$16 sps:$4 sm:$0xff]  }
  0xbf   : > { %1965 = vmatprep.subr.bf16.mxu1 %v2770_v57  ;;  %v2856_v57 = vld [vmem:[%s3287_s8 + $0x3c8] ss:$16 sps:$4 sm:$0xff]  }
  0xc1   : > { %1925 = vmatpush2.bf16.msra.mxu0 %v2765_v58  ;;  %v2861_v58 = vld [vmem:[%s3287_s8 + $0x1ac] ss:$16 sps:$4 sm:$0xff]  }
  0xc2   : > { %1966 = vmatpush2.bf16.msra.mxu1 %v2768_v59  ;;  %1926 = vmatprep.subr.bf16.mxu0 %v2773_v60  ;;  %v2864_v59 = vld [vmem:[%s3287_s8 + $0x3ac] ss:$16 sps:$4 sm:$0xff]   ;;  %v2859_v60 = vld [vmem:[%s3287_s8 + $0x1a8] ss:$16 sps:$4 sm:$0xff]  }
  0xc3   : > { %1967 = vmatprep.subr.bf16.mxu1 %v2776_v61  ;;  %v2862_v61 = vld [vmem:[%s3287_s8 + $0x3a8] ss:$16 sps:$4 sm:$0xff]  }
  0xc5   : > { %1927 = vmatpush2.bf16.msra.mxu0 %v2771_v62  ;;  %v2867_v62 = vld [vmem:[%s3287_s8 + $0x18c] ss:$16 sps:$4 sm:$0xff]  }
  0xc6   : > { %1968 = vmatpush2.bf16.msra.mxu1 %v2774_v63  ;;  %1928 = vmatprep.subr.bf16.mxu0 %v2779_v0  ;;  %v2870_v63 = vld [vmem:[%s3287_s8 + $0x38c] ss:$16 sps:$4 sm:$0xff]   ;;  %v2865_v0 = vld [vmem:[%s3287_s8 + $0x188] ss:$16 sps:$4 sm:$0xff]  }
  0xc7   : > { %1969 = vmatprep.subr.bf16.mxu1 %v2782_v1  ;;  %v2868_v1 = vld [vmem:[%s3287_s8 + $0x388] ss:$16 sps:$4 sm:$0xff]  }
  0xc9   : > { %1929 = vmatpush2.bf16.msra.mxu0 %v2777_v2  ;;  %v2873_v2 = vld [vmem:[%s3287_s8 + $0x16c] ss:$16 sps:$4 sm:$0xff]  }
  0xca   : > { %1970 = vmatpush2.bf16.msra.mxu1 %v2780_v3  ;;  %1930 = vmatprep.subr.bf16.mxu0 %v2785_v4  ;;  %v2876_v3 = vld [vmem:[%s3287_s8 + $0x36c] ss:$16 sps:$4 sm:$0xff]   ;;  %v2871_v4 = vld [vmem:[%s3287_s8 + $0x168] ss:$16 sps:$4 sm:$0xff]  }
  0xcb   : > { %1971 = vmatprep.subr.bf16.mxu1 %v2788_v5  ;;  %v2874_v5 = vld [vmem:[%s3287_s8 + $0x368] ss:$16 sps:$4 sm:$0xff]  }
  0xcd   : > { %1931 = vmatpush2.bf16.msra.mxu0 %v2783_v8  ;;  %v2879_v8 = vld [vmem:[%s3287_s8 + $0x14c] ss:$16 sps:$4 sm:$0xff]  }
  0xce   : > { %1972 = vmatpush2.bf16.msra.mxu1 %v2786_v9  ;;  %1932 = vmatprep.subr.bf16.mxu0 %v2791_v10  ;;  %v2882_v9 = vld [vmem:[%s3287_s8 + $0x34c] ss:$16 sps:$4 sm:$0xff]   ;;  %v2877_v10 = vld [vmem:[%s3287_s8 + $0x148] ss:$16 sps:$4 sm:$0xff]  }
  0xcf   : > { %1973 = vmatprep.subr.bf16.mxu1 %v2794_v11  ;;  %v2880_v11 = vld [vmem:[%s3287_s8 + $0x348] ss:$16 sps:$4 sm:$0xff]  }
  0xd1   : > { %1933 = vmatpush2.bf16.msra.mxu0 %v2789_v12  ;;  %v2885_v12 = vld [vmem:[%s3287_s8 + $0x12c] ss:$16 sps:$4 sm:$0xff]  }
  0xd2   : > { %1974 = vmatpush2.bf16.msra.mxu1 %v2792_v13  ;;  %1984 = vmatprep.subr.bf16.mxu0 %v2801_v14  ;;  %v2888_v13 = vld [vmem:[%s3287_s8 + $0x32c] ss:$16 sps:$4 sm:$0xff]   ;;  %v2883_v14 = vld [vmem:[%s3287_s8 + $0x128] ss:$16 sps:$4 sm:$0xff]  }
  0xd3   : > { %2025 = vmatprep.subr.bf16.mxu1 %v2804_v15  ;;  %v2886_v15 = vld [vmem:[%s3287_s8 + $0x328] ss:$16 sps:$4 sm:$0xff]  }
  0xd4   : > { %1935 = vmatmul.mubr.bf16.vlgmr.msra.gmra.mxu0 %v3471_v16 }
  0xd5   : > { %1976 = vmatmul.mubr.bf16.vlgmr.msra.gmra.mxu1 %v3475_v17  ;;  %1985 = vmatpush1.bf16.msra.mxu0 %v2799_v18  ;;  %v2891_v18 = vld [vmem:[%s3287_s8 + $0x10c] ss:$16 sps:$4 sm:$0xff]  }
  0xd6   : > { %2026 = vmatpush1.bf16.msra.mxu1 %v2802_v19  ;;  %1986 = vmatprep.subr.bf16.mxu0 %v2807_v20  ;;  %v2894_v19 = vld [vmem:[%s3287_s8 + $0x30c] ss:$16 sps:$4 sm:$0xff]   ;;  %v2889_v20 = vld [vmem:[%s3287_s8 + $0x108] ss:$16 sps:$4 sm:$0xff]  }
  0xd7   : > { %2027 = vmatprep.subr.bf16.mxu1 %v2810_v21  ;;  %2016 = vmatprep.mubr.bf16.mxu0 %v3350_v47  ;;  %v2825_v47 = vld [vmem:[%s3287_s8 + $0x6c] ss:$16 sps:$4 sm:$0xff]   ;;  %v2892_v21 = vld [vmem:[%s3287_s8 + $0x308] ss:$16 sps:$4 sm:$0xff]  }
  0xd8   : > { %2057 = vmatprep.mubr.bf16.mxu1 %v3357_v51  ;;  %v2828_v51 = vld [vmem:[%s3287_s8 + $0x26c] ss:$16 sps:$4 sm:$0xff]  }
  0xd9   : > { %1987 = vmatpush1.bf16.msra.mxu0 %v2805_v22  ;;  %v2897_v22 = vld [vmem:[%s3287_s8 + $0x4ec] ss:$16 sps:$4 sm:$0xff]  }
  0xda   : > { %2028 = vmatpush1.bf16.msra.mxu1 %v2808_v23  ;;  %1988 = vmatprep.subr.bf16.mxu0 %v2813_v24  ;;  %v2900_v23 = vld [vmem:[%s3287_s8 + $0x6ec] ss:$16 sps:$4 sm:$0xff]   ;;  %v2895_v24 = vld [vmem:[%s3287_s8 + $0x4e8] ss:$16 sps:$4 sm:$0xff]  }
  0xdb   : > { %2029 = vmatprep.subr.bf16.mxu1 %v2816_v25  ;;  %v2898_v25 = vld [vmem:[%s3287_s8 + $0x6e8] ss:$16 sps:$4 sm:$0xff]  }
  0xdd   : > { %1989 = vmatpush1.bf16.msra.mxu0 %v2811_v26  ;;  %v2903_v26 = vld [vmem:[%s3287_s8 + $0x4cc] ss:$16 sps:$4 sm:$0xff]  }
  0xde   : > { %2030 = vmatpush1.bf16.msra.mxu1 %v2814_v27  ;;  %1990 = vmatprep.subr.bf16.mxu0 %v2819_v28  ;;  %v2906_v27 = vld [vmem:[%s3287_s8 + $0x6cc] ss:$16 sps:$4 sm:$0xff]   ;;  %v2901_v28 = vld [vmem:[%s3287_s8 + $0x4c8] ss:$16 sps:$4 sm:$0xff]  }
  0xdf   : > { %2031 = vmatprep.subr.bf16.mxu1 %v2822_v29  ;;  %v2904_v29 = vld [vmem:[%s3287_s8 + $0x6c8] ss:$16 sps:$4 sm:$0xff]  }
  0xe1   : > { %1991 = vmatpush1.bf16.msra.mxu0 %v2817_v30  ;;  %v2909_v30 = vld [vmem:[%s3287_s8 + $0x4ac] ss:$16 sps:$4 sm:$0xff]  }
  0xe2   : > { %2032 = vmatpush1.bf16.msra.mxu1 %v2820_v31  ;;  %1992 = vmatprep.subr.bf16.mxu0 %v2825_v47  ;;  %v2912_v31 = vld [vmem:[%s3287_s8 + $0x6ac] ss:$16 sps:$4 sm:$0xff]  }
  0xe3   : > { %2033 = vmatprep.subr.bf16.mxu1 %v2828_v51  ;;  %v2915_v47 = vld [vmem:[%s3287_s8 + $0x48c] ss:$16 sps:$4 sm:$0xff]  }
  0xe4   : > { %v2918_v51 = vld [vmem:[%s3287_s8 + $0x68c] ss:$16 sps:$4 sm:$0xff]  }
  0xe5   : > { %1993 = vmatpush1.bf16.msra.mxu0 %v2823_v32  ;;  %v2913_v32 = vld [vmem:[%s3287_s8 + $0x488] ss:$16 sps:$4 sm:$0xff]  }
  0xe6   : > { %2034 = vmatpush1.bf16.msra.mxu1 %v2826_v33  ;;  %1994 = vmatprep.subr.bf16.mxu0 %v2831_v34  ;;  %v2924_v33 = vld [vmem:[%s3287_s8 + $0x66c] ss:$16 sps:$4 sm:$0xff]   ;;  %v2919_v34 = vld [vmem:[%s3287_s8 + $0x468] ss:$16 sps:$4 sm:$0xff]  }
  0xe7   : > { %2035 = vmatprep.subr.bf16.mxu1 %v2834_v35  ;;  %v2922_v35 = vld [vmem:[%s3287_s8 + $0x668] ss:$16 sps:$4 sm:$0xff]  }
  0xe9   : > { %1995 = vmatpush1.bf16.msra.mxu0 %v2829_v38  ;;  %v2927_v38 = vld [vmem:[%s3287_s8 + $0x44c] ss:$16 sps:$4 sm:$0xff]  }
  0xea   : > { %2036 = vmatpush1.bf16.msra.mxu1 %v2832_v39  ;;  %1996 = vmatprep.subr.bf16.mxu0 %v2837_v40  ;;  %v2930_v39 = vld [vmem:[%s3287_s8 + $0x64c] ss:$16 sps:$4 sm:$0xff]   ;;  %v2925_v40 = vld [vmem:[%s3287_s8 + $0x448] ss:$16 sps:$4 sm:$0xff]  }
  0xeb   : > { %2037 = vmatprep.subr.bf16.mxu1 %v2840_v41  ;;  %v2928_v41 = vld [vmem:[%s3287_s8 + $0x648] ss:$16 sps:$4 sm:$0xff]  }
  0xed   : > { %1997 = vmatpush1.bf16.msra.mxu0 %v2835_v42  ;;  %v2933_v42 = vld [vmem:[%s3287_s8 + $0x42c] ss:$16 sps:$4 sm:$0xff]  }
  0xee   : > { %2038 = vmatpush1.bf16.msra.mxu1 %v2838_v43  ;;  %1998 = vmatprep.subr.bf16.mxu0 %v2843_v44  ;;  %v2936_v43 = vld [vmem:[%s3287_s8 + $0x62c] ss:$16 sps:$4 sm:$0xff]   ;;  %v2931_v44 = vld [vmem:[%s3287_s8 + $0x428] ss:$16 sps:$4 sm:$0xff]  }
  0xef   : > { %2039 = vmatprep.subr.bf16.mxu1 %v2846_v45  ;;  %v2934_v45 = vld [vmem:[%s3287_s8 + $0x628] ss:$16 sps:$4 sm:$0xff]  }
  0xf1   : > { %1999 = vmatpush1.bf16.msra.mxu0 %v2841_v46  ;;  %v2939_v46 = vld [vmem:[%s3287_s8 + $0x40c] ss:$16 sps:$4 sm:$0xff]  }
  0xf2   : > { %2040 = vmatpush1.bf16.msra.mxu1 %v2844_v48  ;;  %2000 = vmatprep.subr.bf16.mxu0 %v2849_v49  ;;  %v2942_v48 = vld [vmem:[%s3287_s8 + $0x60c] ss:$16 sps:$4 sm:$0xff]   ;;  %v2937_v49 = vld [vmem:[%s3287_s8 + $0x408] ss:$16 sps:$4 sm:$0xff]  }
  0xf3   : > { %2041 = vmatprep.subr.bf16.mxu1 %v2852_v50  ;;  %v2940_v50 = vld [vmem:[%s3287_s8 + $0x608] ss:$16 sps:$4 sm:$0xff]  }
  0xf5   : > { %2001 = vmatpush2.bf16.msra.mxu0 %v2847_v52  ;;  %v2945_v52 = vld [vmem:[%s3287_s8 + $0x5ec] ss:$16 sps:$4 sm:$0xff]  }
  0xf6   : > { %2042 = vmatpush2.bf16.msra.mxu1 %v2850_v53  ;;  %2002 = vmatprep.subr.bf16.mxu0 %v2855_v54  ;;  %v2948_v53 = vld [vmem:[%s3287_s8 + $0x7ec] ss:$16 sps:$4 sm:$0xff]   ;;  %v2943_v54 = vld [vmem:[%s3287_s8 + $0x5e8] ss:$16 sps:$4 sm:$0xff]  }
  0xf7   : > { %2043 = vmatprep.subr.bf16.mxu1 %v2858_v55  ;;  %v2946_v55 = vld [vmem:[%s3287_s8 + $0x7e8] ss:$16 sps:$4 sm:$0xff]  }
  0xf9   : > { %2003 = vmatpush2.bf16.msra.mxu0 %v2853_v56  ;;  %v2951_v56 = vld [vmem:[%s3287_s8 + $0x5cc] ss:$16 sps:$4 sm:$0xff]  }
  0xfa   : > { %2044 = vmatpush2.bf16.msra.mxu1 %v2856_v57  ;;  %2004 = vmatprep.subr.bf16.mxu0 %v2861_v58  ;;  %v2954_v57 = vld [vmem:[%s3287_s8 + $0x7cc] ss:$16 sps:$4 sm:$0xff]   ;;  %v2949_v58 = vld [vmem:[%s3287_s8 + $0x5c8] ss:$16 sps:$4 sm:$0xff]  }
  0xfb   : > { %2045 = vmatprep.subr.bf16.mxu1 %v2864_v59  ;;  %v2952_v59 = vld [vmem:[%s3287_s8 + $0x7c8] ss:$16 sps:$4 sm:$0xff]  }
  0xfd   : > { %2005 = vmatpush2.bf16.msra.mxu0 %v2859_v60  ;;  %v2957_v60 = vld [vmem:[%s3287_s8 + $0x5ac] ss:$16 sps:$4 sm:$0xff]  }
  0xfe   : > { %2046 = vmatpush2.bf16.msra.mxu1 %v2862_v61  ;;  %2006 = vmatprep.subr.bf16.mxu0 %v2867_v62  ;;  %v2960_v61 = vld [vmem:[%s3287_s8 + $0x7ac] ss:$16 sps:$4 sm:$0xff]   ;;  %v2955_v62 = vld [vmem:[%s3287_s8 + $0x5a8] ss:$16 sps:$4 sm:$0xff]  }
  0xff   : > { %2047 = vmatprep.subr.bf16.mxu1 %v2870_v63  ;;  %v2958_v63 = vld [vmem:[%s3287_s8 + $0x7a8] ss:$16 sps:$4 sm:$0xff]  }
 0x101   : > { %2007 = vmatpush2.bf16.msra.mxu0 %v2865_v0  ;;  %v2963_v0 = vld [vmem:[%s3287_s8 + $0x58c] ss:$16 sps:$4 sm:$0xff]  }
 0x102   : > { %2048 = vmatpush2.bf16.msra.mxu1 %v2868_v1  ;;  %2008 = vmatprep.subr.bf16.mxu0 %v2873_v2  ;;  %v2966_v1 = vld [vmem:[%s3287_s8 + $0x78c] ss:$16 sps:$4 sm:$0xff]   ;;  %v2961_v2 = vld [vmem:[%s3287_s8 + $0x588] ss:$16 sps:$4 sm:$0xff]  }
 0x103   : > { %2049 = vmatprep.subr.bf16.mxu1 %v2876_v3  ;;  %v2964_v3 = vld [vmem:[%s3287_s8 + $0x788] ss:$16 sps:$4 sm:$0xff]  }
 0x105   : > { %2009 = vmatpush2.bf16.msra.mxu0 %v2871_v4  ;;  %v2969_v4 = vld [vmem:[%s3287_s8 + $0x56c] ss:$16 sps:$4 sm:$0xff]  }
 0x106   : > { %2050 = vmatpush2.bf16.msra.mxu1 %v2874_v5  ;;  %2010 = vmatprep.subr.bf16.mxu0 %v2879_v8  ;;  %v2972_v5 = vld [vmem:[%s3287_s8 + $0x76c] ss:$16 sps:$4 sm:$0xff]   ;;  %v2967_v8 = vld [vmem:[%s3287_s8 + $0x568] ss:$16 sps:$4 sm:$0xff]  }
 0x107   : > { %2051 = vmatprep.subr.bf16.mxu1 %v2882_v9  ;;  %v2970_v9 = vld [vmem:[%s3287_s8 + $0x768] ss:$16 sps:$4 sm:$0xff]  }
 0x109   : > { %2011 = vmatpush2.bf16.msra.mxu0 %v2877_v10  ;;  %v2975_v10 = vld [vmem:[%s3287_s8 + $0x54c] ss:$16 sps:$4 sm:$0xff]  }
 0x10a   : > { %2052 = vmatpush2.bf16.msra.mxu1 %v2880_v11  ;;  %2012 = vmatprep.subr.bf16.mxu0 %v2885_v12  ;;  %v2978_v11 = vld [vmem:[%s3287_s8 + $0x74c] ss:$16 sps:$4 sm:$0xff]   ;;  %v2973_v12 = vld [vmem:[%s3287_s8 + $0x548] ss:$16 sps:$4 sm:$0xff]  }
 0x10b   : > { %2053 = vmatprep.subr.bf16.mxu1 %v2888_v13  ;;  %v2976_v13 = vld [vmem:[%s3287_s8 + $0x748] ss:$16 sps:$4 sm:$0xff]  }
 0x10d   : > { %2013 = vmatpush2.bf16.msra.mxu0 %v2883_v14  ;;  %v2981_v14 = vld [vmem:[%s3287_s8 + $0x52c] ss:$16 sps:$4 sm:$0xff]  }
 0x10e   : > { %2054 = vmatpush2.bf16.msra.mxu1 %v2886_v15  ;;  %2014 = vmatprep.subr.bf16.mxu0 %v2891_v18  ;;  %v2984_v15 = vld [vmem:[%s3287_s8 + $0x72c] ss:$16 sps:$4 sm:$0xff]   ;;  %v2979_v18 = vld [vmem:[%s3287_s8 + $0x528] ss:$16 sps:$4 sm:$0xff]  }
 0x10f   : > { %2055 = vmatprep.subr.bf16.mxu1 %v2894_v19  ;;  %v2982_v19 = vld [vmem:[%s3287_s8 + $0x728] ss:$16 sps:$4 sm:$0xff]  }
 0x111   : > { %2015 = vmatpush2.bf16.msra.mxu0 %v2889_v20  ;;  %v2987_v20 = vld [vmem:[%s3287_s8 + $0x50c] ss:$16 sps:$4 sm:$0xff]  }
 0x112   : > { %2056 = vmatpush2.bf16.msra.mxu1 %v2892_v21  ;;  %2066 = vmatprep.subr.bf16.mxu0 %v2897_v22  ;;  %v2990_v21 = vld [vmem:[%s3287_s8 + $0x70c] ss:$16 sps:$4 sm:$0xff]   ;;  %v2985_v22 = vld [vmem:[%s3287_s8 + $0x508] ss:$16 sps:$4 sm:$0xff]  }
 0x113   : > { %2107 = vmatprep.subr.bf16.mxu1 %v2900_v23  ;;  %v2988_v23 = vld [vmem:[%s3287_s8 + $0x708] ss:$16 sps:$4 sm:$0xff]  }
 0x114   : > { %2017 = vmatmul.mubr.bf16.vlgmr.msra.gmra.mxu0 %v3379_v6  ;;  %v2907_v6 = vld [vmem:[%s3287_s8 + $0x4a8] ss:$16 sps:$4 sm:$0xff]  }
 0x115   : > { %2058 = vmatmul.mubr.bf16.vlgmr.msra.gmra.mxu1 %v3381_v7  ;;  %2067 = vmatpush1.bf16.msra.mxu0 %v2895_v24  ;;  %v2910_v7 = vld [vmem:[%s3287_s8 + $0x6a8] ss:$16 sps:$4 sm:$0xff]  }
 0x116   : > { %2108 = vmatpush1.bf16.msra.mxu1 %v2898_v25  ;;  %2068 = vmatprep.subr.bf16.mxu0 %v2903_v26 }
 0x117   : > { %2109 = vmatprep.subr.bf16.mxu1 %v2906_v27  ;;  %2098 = vmatprep.mubr.bf16.mxu0 %v3423_v36  ;;  %v2916_v36 = vld [vmem:[%s3287_s8 + $0x688] ss:$16 sps:$4 sm:$0xff]  }
 0x118   : > { %2139 = vmatprep.mubr.bf16.mxu1 %v3427_v37  ;;  %v2921_v37 = vld [vmem:[%s3287_s8 + $0x46c] ss:$16 sps:$4 sm:$0xff]  }
 0x119   : > { %2069 = vmatpush1.bf16.msra.mxu0 %v2901_v28 }
 0x11a   : > { %2110 = vmatpush1.bf16.msra.mxu1 %v2904_v29  ;;  %2070 = vmatprep.subr.bf16.mxu0 %v2909_v30 }
 0x11b   : > { %2111 = vmatprep.subr.bf16.mxu1 %v2912_v31 }
 0x11d   : > { %2071 = vmatpush1.bf16.msra.mxu0 %v2907_v6  ;;  %v492_v6 = vlaneseq }
 0x11e   : > { %2112 = vmatpush1.bf16.msra.mxu1 %v2910_v7  ;;  %2072 = vmatprep.subr.bf16.mxu0 %v2915_v47 }
 0x11f   : > { %2113 = vmatprep.subr.bf16.mxu1 %v2918_v51  ;;  %v493_v7 = vshrl.u32 %v492_v6, 7  ;;  %v490_v51 = vld [vmem:[%s3295_s22] sm:$0xf]  ;;  %s3122_s22 = smov [#allocation7]  }
 0x120   : > { %s3051_s23 = sshll.u32 %s3122_s22, 4  ;;  %s3052_s23 = int_to_ptr.vmem [resolvable:$false] %s3051_s23 }
 0x121   : > { %2073 = vmatpush1.bf16.msra.mxu0 %v2913_v32  ;;  %v494_v47 = vsub.s32 0, %v493_v7  ;;  %v498_v32 = vsub.s32 1, %v493_v7  ;;  %s3053_s28 = scalar_lea.vmem %s3052_s23, 1024  ;;  %p3054_p10 = scmp.lt.s32.totalorder %s3627_s27, %s3052_s23 }
 0x122   : > { %2114 = vmatpush1.bf16.msra.mxu1 %v2916_v36  ;;  %2074 = vmatprep.subr.bf16.mxu0 %v2921_v37  ;;  %p3055_p1 = scmp.lt.s32.totalorder %s3053_s28, %s3047_s17 }
 0x123   : > { %2115 = vmatprep.subr.bf16.mxu1 %v2924_v33  ;;  %v495_v36 = vrot.slane %v490_v51, %v494_v47  ;;  %v499_v37 = vrot.slane %v490_v51, %v498_v32 }
 0x124   : > { %p3056_p3 = por %p3055_p1, %p3054_p10 }
 0x125   : > { %2075 = vmatpush1.bf16.msra.mxu0 %v2919_v34 }
 0x126   : > { %2116 = vmatpush1.bf16.msra.mxu1 %v2922_v35  ;;  %2076 = vmatprep.subr.bf16.mxu0 %v2927_v38  ;;  %p3057_p5 = pnand %p3056_p3, %p3050_p8 }
 0x127   : > { %2117 = vmatprep.subr.bf16.mxu1 %v2930_v39 }
 0x129   : > { %2077 = vmatpush1.bf16.msra.mxu0 %v2925_v40 }
 0x12a   : > { %2118 = vmatpush1.bf16.msra.mxu1 %v2928_v41  ;;  %2078 = vmatprep.subr.bf16.mxu0 %v2933_v42 }
 0x12b   : > { %2119 = vmatprep.subr.bf16.mxu1 %v2936_v43 }
 0x12d   : > { %2079 = vmatpush1.bf16.msra.mxu0 %v2931_v44 }
 0x12e   : > { %2120 = vmatpush1.bf16.msra.mxu1 %v2934_v45  ;;  %2080 = vmatprep.subr.bf16.mxu0 %v2939_v46 }
 0x12f   : > { %2121 = vmatprep.subr.bf16.mxu1 %v2942_v48 }
 0x131   : > { %2081 = vmatpush1.bf16.msra.mxu0 %v2937_v49 }
 0x132   : > { %2122 = vmatpush1.bf16.msra.mxu1 %v2940_v50  ;;  %2082 = vmatprep.subr.bf16.mxu0 %v2945_v52 }
 0x133   : > { %2123 = vmatprep.subr.bf16.mxu1 %v2948_v53 }
 0x135   : > { %2083 = vmatpush2.bf16.msra.mxu0 %v2943_v54 }
 0x136   : > { %2124 = vmatpush2.bf16.msra.mxu1 %v2946_v55  ;;  %2084 = vmatprep.subr.bf16.mxu0 %v2951_v56 }
 0x137   : > { %2125 = vmatprep.subr.bf16.mxu1 %v2954_v57 }
 0x139   : > { %2085 = vmatpush2.bf16.msra.mxu0 %v2949_v58 }
 0x13a   : > { %2126 = vmatpush2.bf16.msra.mxu1 %v2952_v59  ;;  %2086 = vmatprep.subr.bf16.mxu0 %v2957_v60  ;;  %v502_v59 = vsub.s32 2, %v493_v7  ;;  %v506_v60 = vsub.s32 3, %v493_v7 }
 0x13b   : > { %2127 = vmatprep.subr.bf16.mxu1 %v2960_v61 }
 0x13c   : > { %v503_v61 = vrot.slane %v490_v51, %v502_v59 }
 0x13d   : > { %2087 = vmatpush2.bf16.msra.mxu0 %v2955_v62  ;;  %v507_v62 = vrot.slane %v490_v51, %v506_v60 }
 0x13e   : > { %2128 = vmatpush2.bf16.msra.mxu1 %v2958_v63  ;;  %2088 = vmatprep.subr.bf16.mxu0 %v2963_v0 }
 0x13f   : > { %2129 = vmatprep.subr.bf16.mxu1 %v2966_v1 }
 0x141   : > { %2089 = vmatpush2.bf16.msra.mxu0 %v2961_v2 }
 0x142   : > { %2130 = vmatpush2.bf16.msra.mxu1 %v2964_v3  ;;  %2090 = vmatprep.subr.bf16.mxu0 %v2969_v4 }
 0x143   : > { %2131 = vmatprep.subr.bf16.mxu1 %v2972_v5 }
 0x145   : > { %2091 = vmatpush2.bf16.msra.mxu0 %v2967_v8 }
 0x146   : > { %2132 = vmatpush2.bf16.msra.mxu1 %v2970_v9  ;;  %2092 = vmatprep.subr.bf16.mxu0 %v2975_v10 }
 0x147   : > { %2133 = vmatprep.subr.bf16.mxu1 %v2978_v11 }
 0x149   : > { %2093 = vmatpush2.bf16.msra.mxu0 %v2973_v12 }
 0x14a   : > { %2134 = vmatpush2.bf16.msra.mxu1 %v2976_v13  ;;  %2094 = vmatprep.subr.bf16.mxu0 %v2981_v14 }
 0x14b   : > { %2135 = vmatprep.subr.bf16.mxu1 %v2984_v15 }
 0x14d   : > { %2095 = vmatpush2.bf16.msra.mxu0 %v2979_v18 }
 0x14e   : > { %2136 = vmatpush2.bf16.msra.mxu1 %v2982_v19  ;;  %2096 = vmatprep.subr.bf16.mxu0 %v2987_v20 }
 0x14f   : > { %2137 = vmatprep.subr.bf16.mxu1 %v2990_v21 }
 0x151   : > { %2097 = vmatpush2.bf16.msra.mxu0 %v2985_v22 }
 0x152   : > { %2138 = vmatpush2.bf16.msra.mxu1 %v2988_v23 }
 0x154   : > { %v1854_v24 = vpop.f32.mrf.mxu0  ;;  %2099 = vmatmul.mubr.bf16.vlgmr.msra.gmra.mxu0 %v3471_v16 }
 0x155   : > { %v1895_v25 = vpop.f32.mrf.mxu1  ;;  %2140 = vmatmul.mubr.bf16.vlgmr.msra.gmra.mxu1 %v3475_v17  ;;  %v1855_v33 = vadd.f32 %v1854_v24, %v495_v36 }
 0x156   : > { %v1856_v26 = vpop.f32.mrf.mxu0 }
 0x157   : > { %v1897_v27 = vpop.f32.mrf.mxu1  ;;  %v1857_v34 = vadd.f32 %v1856_v26, %v499_v37  ;;  %v1896_v35 = vadd.f32 %v1895_v25, %v1855_v33 }
 0x158   : > { %v1858_v28 = vpop.f32.mrf.mxu0 }
 0x159   : > { %v1899_v29 = vpop.f32.mrf.mxu1  ;;  %v1898_v38 = vadd.f32 %v1897_v27, %v1857_v34 }
 0x15a   : > { %v1859_v30 = vpop.f32.mrf.mxu0 }
 0x15b   : > { %v1900_v31 = vpop.f32.mrf.mxu1 }
 0x194   : > { %v1936_v16 = vpop.f32.mrf.mxu0 }
 0x195   : > { %v1977_v17 = vpop.f32.mrf.mxu1  ;;  %v1937_v39 = vadd.f32 %v1936_v16, %v1896_v35 }
 0x196   : > { %v1938_v40 = vpop.f32.mrf.mxu0 }
 0x197   : > { %v1979_v41 = vpop.f32.mrf.mxu1  ;;  %v1978_v42 = vadd.f32 %v1977_v17, %v1937_v39  ;;  %v1939_v43 = vadd.f32 %v1938_v40, %v1898_v38 }
 0x198   : > { %v1940_v44 = vpop.f32.mrf.mxu0 }
 0x199   : > { %v1981_v45 = vpop.f32.mrf.mxu1  ;;  %2148 = vst [vmem:[%s3615_s11] sm:$0xff] %v1978_v42  ;;  %v1980_v46 = vadd.f32 %v1979_v41, %v1939_v43 }
 0x19a   : > { %v1941_v48 = vpop.f32.mrf.mxu0 }
 0x19b   : > { %v1982_v49 = vpop.f32.mrf.mxu1  ;;  %2149 = vst [vmem:[%s3615_s11 + $0x8] sm:$0xff] %v1980_v46 }
 0x1d4   : > { %v2018_v50 = vpop.f32.mrf.mxu0 }
 0x1d5   : > { %v2059_v52 = vpop.f32.mrf.mxu1  ;;  %v2019_v63 = vadd.f32 %v2018_v50, %v503_v61 }
 0x1d6   : > { %v2020_v53 = vpop.f32.mrf.mxu0 }
 0x1d7   : > { %v2061_v54 = vpop.f32.mrf.mxu1  ;;  %v2021_v0 = vadd.f32 %v2020_v53, %v507_v62  ;;  %v2060_v1 = vadd.f32 %v2059_v52, %v2019_v63 }
 0x1d8   : > { %v2022_v55 = vpop.f32.mrf.mxu0 }
 0x1d9   : > { %v2063_v56 = vpop.f32.mrf.mxu1  ;;  %v2062_v4 = vadd.f32 %v2061_v54, %v2021_v0 }
 0x1da   : > { %v2023_v57 = vpop.f32.mrf.mxu0 }
 0x1db   : > { %v2064_v58 = vpop.f32.mrf.mxu1 }
 0x214   : > { %v2100_v2 = vpop.f32.mrf.mxu0 }
 0x215   : > { %v2141_v3 = vpop.f32.mrf.mxu1  ;;  %v2101_v5 = vadd.f32 %v2100_v2, %v2060_v1 }
 0x216   : > { %v2102_v8 = vpop.f32.mrf.mxu0 }
 0x217   : > { %v2143_v9 = vpop.f32.mrf.mxu1  ;;  %v2142_v10 = vadd.f32 %v2141_v3, %v2101_v5  ;;  %v2103_v11 = vadd.f32 %v2102_v8, %v2062_v4 }
 0x218   : > { %v2104_v12 = vpop.f32.mrf.mxu0 }
 0x219   : > { %v2145_v13 = vpop.f32.mrf.mxu1  ;;  %2150 = vst [vmem:[%s3615_s11 + $0x10] sm:$0xff] %v2142_v10  ;;  %v2144_v14 = vadd.f32 %v2143_v9, %v2103_v11 }
 0x21a   : > { %v2105_v15 = vpop.f32.mrf.mxu0 }
 0x21b   : > { %v2146_v18 = vpop.f32.mrf.mxu1  ;;  %2151 = vst [vmem:[%s3615_s11 + $0x18] sm:$0xff] %v2144_v14 }
 0x21c   : > { %3060 = shalt.err (!%p3057_p5)
}
 0x21d   : > { %s3061_s4 = scalar_lea.hbm %s3625_s7, 512  ;;  %s3065_s30 = scalar_lea.hbm %s3672_s3, 1024 }
 0x21e   : > { %p3062_p9 = scmp.ne.s32.totalorder %s3625_s7, %s3061_s4  ;;  %p3066_p4 = scmp.lt.s32.totalorder %s3625_s7, %s3672_s3 }
 0x21f   : > { %p3067_p7 = scmp.lt.s32.totalorder %s3065_s30, %s3061_s4 }
 0x220   : > { %p3063_p11 = pnand %p3062_p9, %p3684_p13 }
 0x221   : > { %p3068_p2 = por %p3067_p7, %p3066_p4 }
 0x222   : > { %p3064_p0 = pneg %p3063_p11 }
 0x224   : > { %p3069_p6 = pnand %p3068_p2, %p3064_p0 }
 0x226   : > { %3072 = shalt.err (!%p3069_p6)
}
 0x227   : > { %2549 = dma.vmem_to_hbm [thread:$0]  (%p3684_p13), %s3627_s27, 512, %s3625_s7, %s2153_s16  }
 0x228 PF: > { %s2179_s10 = sand.u32 1, %s3103_s12   ;;  %p3685_p12 = scmp.ne.s32.totalorder %s3678_s25, 0 }
 0x229   : > { %p3686_p8 = scmp.ge.s32.totalorder %s3115_s15, 2  ;;  %s2180_s26 = scalar_lea.sflag [#allocation4], %s2179_s10 }
 0x22b   : > { %p2559_p10 = pnand %p3686_p8, %p3685_p12 }
 0x22d   : > { %p2560_p1 = pneg %p2559_p10 }
 0x22f   : > { %3098 = dma.done.wait (%p2560_p1), %s2180_s26, 512  }
 0x230   : > { %3100 = vsyncadd (%p2560_p1), %s2180_s26, 4294966784  ;;  %p19_p3 = scmp.ge.s32.totalorder %s3168_s18, 4   ;;  %s3687_s12 = smov %s3107_s13 }
 0x231   : > { %s3688_s13 = smov %s3111_s14  ;;  %s3689_s14 = smov %s3180_s21 }
 0x232   : > { %s3690_s15 = smov %s3168_s18  ;;  %21 = sbr.rel (!%p19_p3) target bundleno = 7 (0x7), region = 90 }
 0x237   :  { %2185 = vsyncpa [#allocation3], 1 }
 0x238   :  { %2187 = vsyncpa [#allocation3 + $0x1], 1 }
 0x239   :  { %2188 = vsyncpa [#allocation6], 1 }
 0x23a   :  { %2190 = vsyncpa [#allocation6 + $0x1], 1 }
 0x23b   :  { %2191 = vsyncpa [#allocation4], 1 }
 0x23c   :  { %2193 = vsyncpa [#allocation4 + $0x1], 1 }

</bundles_post_ra>
